<compile_context>
chip_gen: v5e
topology: v5e:2x2
jax: 0.10.0
libtpu: 0.0.40
codegen_flags: <defaults>
</compile_context>

<pallas_src>
import jax
import jax.numpy as jnp
from jax import lax
from jax.experimental import pallas as pl
from jax.experimental.pallas import tpu as pltpu

HP = 128  # padded hidden width (vreg / MXU lane width)


def _round_up(n, m):
    return ((n + m - 1) // m) * m


def esmm_kernel(x_ref, w1_ref, b1_ref, w2t_ref, b2c_ref, w3c_ref, b3_ref, out_ref):
    # x: (TB, D) f32 -> cast to bf16 in-kernel (MXU-native, no wrapper pass).
    x = x_ref[...].astype(w1_ref.dtype)

    # Layer 1: (TB, D) @ (D, HP) -> (TB, HP), f32 accumulation, bias + ReLU.
    h1 = jnp.dot(x, w1_ref[...], preferred_element_type=jnp.float32) + b1_ref[...]
    h1 = jnp.maximum(h1, 0.0)

    # Layer 2 computed TRANSPOSED: h2t[g, b] = sum_h w2[h, g] * h1[b, h].
    # Contract the last dims of both operands ('gh,bh->gb') so the batch ends
    # up on the lane axis -> the final per-row logit is naturally lane-dense.
    h2t = lax.dot_general(
        w2t_ref[...], h1.astype(w2t_ref.dtype),
        dimension_numbers=(((1,), (1,)), ((), ())),
        preferred_element_type=jnp.float32)          # (HP, TB)
    h2t = jnp.maximum(h2t + b2c_ref[...], 0.0)        # bias as (HP, 1) column

    # Output layer (N=1): VPU multiply + sublane reduce -> (1, TB) lane-dense.
    logit = jnp.sum(h2t * w3c_ref[...], axis=0, keepdims=True) + b3_ref[0]
    p = jax.nn.sigmoid(logit)                          # (1, TB) f32

    out_ref[...] = p.reshape(out_ref.shape)            # (1, 1, TB) block


def _pack_params(params, compute_dtype):
    """Zero-pad hidden width to HP; transpose layer-2 weight; cast matmul weights."""
    w1, b1 = params["w1"], params["b1"]
    w2, b2 = params["w2"], params["b2"]
    w3, b3 = params["w3"], params["b3"]
    d, h1 = w1.shape
    _, h2 = w2.shape

    w1p = jnp.zeros((d, HP), jnp.float32).at[:, :h1].set(w1).astype(compute_dtype)
    b1p = jnp.zeros((1, HP), jnp.float32).at[:, :h1].set(b1)
    # Layer-2 weight pre-transposed: w2t[g, h] = w2[h, g]  (zero padding is inert:
    # padded hidden units get ReLU(0)=0 and zero w3 coefficients).
    w2t = jnp.zeros((HP, HP), jnp.float32).at[:h2, :h1].set(jnp.asarray(w2).T)
    w2t = w2t.astype(compute_dtype)
    b2c = jnp.zeros((HP, 1), jnp.float32).at[:h2, 0].set(jnp.asarray(b2).reshape(-1))
    w3c = jnp.zeros((HP, 1), jnp.float32).at[:h2, 0].set(jnp.asarray(w3).reshape(-1))
    b3s = jnp.asarray(b3, jnp.float32).reshape((1,))   # scalar -> SMEM
    return w1p, b1p, w2t, b2c, w3c, b3s


def esmm_forward(x, params, *, tb=4096, compute_dtype=jnp.bfloat16,
                 vmem_limit_bytes=None):
    """ESMM forward: returns (ctr_out, cvr_out, ctcvr_out), each (B, 1) f32.

    tb: batch tile (multiple of 128).  4096 is a good default for v5e/v6e;
    on v7x (64 MiB VMEM, 2 TCs) keep tb <= ~4096 and pick tb so the grid has
    at least 2 (ideally an even number of) steps.
    """
    B, D = x.shape
    assert tb % 128 == 0, "batch tile must be a multiple of 128"

    w1, b1, w2t, b2c, w3c, b3 = _pack_params(params, compute_dtype)

    x_in = x.astype(jnp.float32)
    if B >= tb:
        # Ragged last block handled by Pallas read-masking; OOB rows produce
        # garbage probabilities that are sliced off below.  No HBM copy of x.
        tbe, rows = tb, B
    else:
        # Whole batch smaller than one tile: shrink the tile to a 128-multiple
        # and pad (tiny, only the small-batch path ever copies).
        tbe = _round_up(B, 128)
        rows = tbe
        if rows != B:
            x_in = jnp.pad(x_in, ((0, rows - B), (0, 0)))

    grid_n = pl.cdiv(rows, tbe)
    const2 = lambda i: (0, 0)  # weights/biases: fetched once, stay VMEM-resident

    itemsize = lambda a: a.size * a.dtype.itemsize
    flops = 2 * grid_n * tbe * (D * HP + HP * HP + HP)
    bytes_accessed = (rows * D * 4
                      + sum(itemsize(a) for a in (w1, b1, w2t, b2c, w3c, b3))
                      + grid_n * tbe * 4)

    slab = pl.pallas_call(
        esmm_kernel,
        out_shape=jax.ShapeDtypeStruct((grid_n, 1, tbe), jnp.float32),
        grid=(grid_n,),
        in_specs=[
            pl.BlockSpec((tbe, D), lambda i: (i, 0)),          # x tile (f32)
            pl.BlockSpec(w1.shape, const2),                    # (D, HP) bf16
            pl.BlockSpec(b1.shape, const2),                    # (1, HP) f32
            pl.BlockSpec(w2t.shape, const2),                   # (HP, HP) bf16
            pl.BlockSpec(b2c.shape, const2),                   # (HP, 1) f32
            pl.BlockSpec(w3c.shape, const2),                   # (HP, 1) f32
            pl.BlockSpec(memory_space=pltpu.MemorySpace.SMEM), # b3 scalar
        ],
        out_specs=pl.BlockSpec((1, 1, tbe), lambda i: (i, 0, 0)),
        compiler_params=pltpu.CompilerParams(
            dimension_semantics=("parallel",),
            vmem_limit_bytes=vmem_limit_bytes),
        cost_estimate=pl.CostEstimate(
            flops=flops, transcendentals=grid_n * tbe,
            bytes_accessed=bytes_accessed),
    )(x_in, w1, b1, w2t, b2c, w3c, b3)

    p = slab.reshape(grid_n * tbe)[:B].reshape(B, 1)
    ctr = p
    cvr = p          # reference forward uses cvr_net for BOTH heads
    ctcvr = p * p    # formed in the wrapper on the tiny (B, 1) result
    return ctr, cvr, ctcvr


def make_params(key, input_dims, hidden_units=(64, 64)):
    h1, h2 = hidden_units
    k1, k2, k3, k4, k5, k6 = jax.random.split(key, 6)
    s = 0.1
    return {
        "w1": s * jax.random.normal(k1, (input_dims, h1), jnp.float32),
        "b1": s * jax.random.normal(k2, (1, h1), jnp.float32),
        "w2": s * jax.random.normal(k3, (h1, h2), jnp.float32),
        "b2": s * jax.random.normal(k4, (1, h2), jnp.float32),
        "w3": s * jax.random.normal(k5, (h2, 1), jnp.float32),
        "b3": s * jax.random.normal(k6, (1, 1), jnp.float32),
    }


def esmm_reference(x, p):
    """Pure-f32 JAX reference matching the PyTorch module semantics."""
    h1 = jnp.maximum(x @ p["w1"] + p["b1"], 0.0)
    h2 = jnp.maximum(h1 @ p["w2"] + p["b2"], 0.0)
    out = jax.nn.sigmoid(h2 @ p["w3"] + p["b3"])
    return out, out, out * out


# TODO(synk): the module's loss() (weighted BCE over two heads) is training-time
# host logic and is intentionally not implemented as a kernel.

if __name__ == "__main__":
    key = jax.random.PRNGKey(0)
    kx, kp = jax.random.split(key)

    B, D = 8, 32  # small batch, input_dims
    x = jax.random.normal(kx, (B, D), jnp.float32)
    params = make_params(kp, D, hidden_units=(64, 64))

    ctr, cvr, ctcvr = esmm_forward(x, params)
    jax.block_until_ready((ctr, cvr, ctcvr))

    ctr_ref, cvr_ref, ctcvr_ref = esmm_reference(x, params)
    assert ctr.shape == (B, 1) and cvr.shape == (B, 1) and ctcvr.shape == (B, 1)
    # Kernel uses bf16 matmul inputs (f32 accumulation); compare to pure-f32 ref.
    assert jnp.allclose(ctr, ctr_ref, atol=5e-3, rtol=5e-3)
    assert jnp.allclose(cvr, cvr_ref, atol=5e-3, rtol=5e-3)
    assert jnp.allclose(ctcvr, ctcvr_ref, atol=5e-3, rtol=5e-3)

    print("KERNEL_OK")
</pallas_src>

<mosaic_0001>
module attributes {stable_mosaic.version = 11 : i64} {
  func.func @esmm_kernel(%arg0: i32, %arg1: memref<128x32xf32, #tpu.memory_space<vmem>>, %arg2: memref<32x128xbf16, #tpu.memory_space<vmem>>, %arg3: memref<1x128xf32, #tpu.memory_space<vmem>>, %arg4: memref<128x128xbf16, #tpu.memory_space<vmem>>, %arg5: memref<128x1xf32, #tpu.memory_space<vmem>>, %arg6: memref<128x1xf32, #tpu.memory_space<vmem>>, %arg7: memref<1xf32, #tpu.memory_space<smem>>, %arg8: memref<1x1x128xf32, #tpu.memory_space<vmem>>) attributes {dimension_semantics = [#tpu.dimension_semantics<parallel>], iteration_bounds = array<i64: 1>, scalar_prefetch = 0 : i64, scratch_operands = 0 : i64, tpu.core_type = #tpu.core_type<tc>, window_params = [{transform_indices = @transform_0, window_bounds = array<i64: 128, 32>}, {pipeline_mode = #tpu.pipeline_mode<synchronous>, transform_indices = @transform_1, window_bounds = array<i64: 32, 128>}, {pipeline_mode = #tpu.pipeline_mode<synchronous>, transform_indices = @transform_2, window_bounds = array<i64: 1, 128>}, {pipeline_mode = #tpu.pipeline_mode<synchronous>, transform_indices = @transform_3, window_bounds = array<i64: 128, 128>}, {pipeline_mode = #tpu.pipeline_mode<synchronous>, transform_indices = @transform_4, window_bounds = array<i64: 128, 1>}, {pipeline_mode = #tpu.pipeline_mode<synchronous>, transform_indices = @transform_5, window_bounds = array<i64: 128, 1>}, {transform_indices = @transform_6, window_bounds = array<i64: 1>}, {transform_indices = @transform_7, window_bounds = array<i64: 1, 1, 128>}]} {
    %c0 = arith.constant 0 : index
    %c0_0 = arith.constant 0 : index
    %0 = vector.load %arg1[%c0, %c0_0] : memref<128x32xf32, #tpu.memory_space<vmem>>, vector<128x32xf32>
    %1 = arith.truncf %0 : vector<128x32xf32> to vector<128x32xbf16>
    %c0_1 = arith.constant 0 : index
    %c0_2 = arith.constant 0 : index
    %2 = vector.load %arg2[%c0_1, %c0_2] : memref<32x128xbf16, #tpu.memory_space<vmem>>, vector<32x128xbf16>
    %cst = arith.constant dense<0.000000e+00> : vector<128x128xf32>
    %3 = tpu.matmul %1, %2, %cst {dimension_numbers = #tpu.dot_dimension_numbers<[1], [0], [0], [1], [0, 0, 1, 1], [], []>} : vector<128x32xbf16>, vector<32x128xbf16>, vector<128x128xf32> -> vector<128x128xf32>
    %c0_3 = arith.constant 0 : index
    %c0_4 = arith.constant 0 : index
    %4 = vector.load %arg3[%c0_3, %c0_4] : memref<1x128xf32, #tpu.memory_space<vmem>>, vector<1x128xf32>
    %5 = vector.broadcast %4 : vector<1x128xf32> to vector<128x128xf32>
    %6 = arith.addf %3, %5 : vector<128x128xf32>
    %cst_5 = arith.constant 0.000000e+00 : f32
    %7 = vector.broadcast %cst_5 : f32 to vector<128x128xf32>
    %8 = arith.maximumf %6, %7 : vector<128x128xf32>
    %c0_6 = arith.constant 0 : index
    %c0_7 = arith.constant 0 : index
    %9 = vector.load %arg4[%c0_6, %c0_7] : memref<128x128xbf16, #tpu.memory_space<vmem>>, vector<128x128xbf16>
    %10 = arith.truncf %8 : vector<128x128xf32> to vector<128x128xbf16>
    %cst_8 = arith.constant dense<0.000000e+00> : vector<128x128xf32>
    %11 = tpu.matmul %9, %10, %cst_8 {dimension_numbers = #tpu.dot_dimension_numbers<[1], [1], [0], [0], [0, 0, 1, 0], [], []>} : vector<128x128xbf16>, vector<128x128xbf16>, vector<128x128xf32> -> vector<128x128xf32>
    %c0_9 = arith.constant 0 : index
    %c0_10 = arith.constant 0 : index
    %12 = vector.load %arg5[%c0_9, %c0_10] : memref<128x1xf32, #tpu.memory_space<vmem>>, vector<128x1xf32>
    %13 = vector.broadcast %12 : vector<128x1xf32> to vector<128x128xf32>
    %14 = arith.addf %11, %13 : vector<128x128xf32>
    %cst_11 = arith.constant 0.000000e+00 : f32
    %15 = vector.broadcast %cst_11 : f32 to vector<128x128xf32>
    %16 = arith.maximumf %14, %15 : vector<128x128xf32>
    %c0_12 = arith.constant 0 : index
    %c0_13 = arith.constant 0 : index
    %17 = vector.load %arg6[%c0_12, %c0_13] : memref<128x1xf32, #tpu.memory_space<vmem>>, vector<128x1xf32>
    %18 = vector.broadcast %17 : vector<128x1xf32> to vector<128x128xf32>
    %19 = arith.mulf %16, %18 : vector<128x128xf32>
    %cst_14 = arith.constant dense<0.000000e+00> : vector<128xf32>
    %20 = vector.multi_reduction <add>, %19, %cst_14 [0] : vector<128x128xf32> to vector<128xf32>
    %21 = vector.shape_cast %20 : vector<128xf32> to vector<1x128xf32>
    %c0_15 = arith.constant 0 : index
    %22 = memref.load %arg7[%c0_15] : memref<1xf32, #tpu.memory_space<smem>>
    %23 = vector.broadcast %22 : f32 to vector<1x128xf32>
    %24 = arith.addf %21, %23 : vector<1x128xf32>
    %25 = arith.negf %24 : vector<1x128xf32>
    %26 = math.exp %25 : vector<1x128xf32>
    %cst_16 = arith.constant 1.000000e+00 : f32
    %27 = vector.broadcast %cst_16 : f32 to vector<1x128xf32>
    %28 = arith.addf %27, %26 : vector<1x128xf32>
    %29 = arith.divf %27, %28 : vector<1x128xf32>
    %30 = vector.shape_cast %29 : vector<1x128xf32> to vector<1x1x128xf32>
    %c0_17 = arith.constant 0 : index
    %c0_18 = arith.constant 0 : index
    %c0_19 = arith.constant 0 : index
    %31 = vector.load %arg8[%c0_17, %c0_18, %c0_19] : memref<1x1x128xf32, #tpu.memory_space<vmem>>, vector<1x1x128xf32>
    tpu.vector_store %arg8[%c0_17, %c0_18, %c0_19], %30 {strides = array<i32>} : memref<1x1x128xf32, #tpu.memory_space<vmem>>, vector<1x1x128xf32>,
    return
  }
  func.func @transform_0(%arg0: i32) -> (i32, i32) {
    %c0_i32 = arith.constant 0 : i32
    %c0_i32_0 = arith.constant 0 : i32
    return %arg0, %c0_i32 : i32, i32
  }
  func.func @transform_1(%arg0: i32) -> (i32, i32) {
    %c0_i32 = arith.constant 0 : i32
    %c0_i32_0 = arith.constant 0 : i32
    %c0_i32_1 = arith.constant 0 : i32
    return %c0_i32, %c0_i32_0 : i32, i32
  }
  func.func @transform_2(%arg0: i32) -> (i32, i32) {
    %c0_i32 = arith.constant 0 : i32
    %c0_i32_0 = arith.constant 0 : i32
    %c0_i32_1 = arith.constant 0 : i32
    return %c0_i32, %c0_i32_0 : i32, i32
  }
  func.func @transform_3(%arg0: i32) -> (i32, i32) {
    %c0_i32 = arith.constant 0 : i32
    %c0_i32_0 = arith.constant 0 : i32
    %c0_i32_1 = arith.constant 0 : i32
    return %c0_i32, %c0_i32_0 : i32, i32
  }
  func.func @transform_4(%arg0: i32) -> (i32, i32) {
    %c0_i32 = arith.constant 0 : i32
    %c0_i32_0 = arith.constant 0 : i32
    %c0_i32_1 = arith.constant 0 : i32
    return %c0_i32, %c0_i32_0 : i32, i32
  }
  func.func @transform_5(%arg0: i32) -> (i32, i32) {
    %c0_i32 = arith.constant 0 : i32
    %c0_i32_0 = arith.constant 0 : i32
    %c0_i32_1 = arith.constant 0 : i32
    return %c0_i32, %c0_i32_0 : i32, i32
  }
  func.func @transform_6(%arg0: i32) -> i32 {
    %c0_i32 = arith.constant 0 : i32
    %c0_i32_0 = arith.constant 0 : i32
    return %c0_i32 : i32
  }
  func.func @transform_7(%arg0: i32) -> (i32, i32, i32) {
    %c0_i32 = arith.constant 0 : i32
    %c0_i32_0 = arith.constant 0 : i32
    %c0_i32_1 = arith.constant 0 : i32
    return %arg0, %c0_i32, %c0_i32_0 : i32, i32, i32
  }
}

</mosaic_0001>

<bundles_post_ra>
// kernel: tpu_custom_call.1
= control target key start
LH: loop header
LB: loop body
LE: loop exit
PB: predicated region body
PF: predicated region fallthrough
CT: control target
= control target key end

     0   :  { %s958_s0 = inlined_call_operand.vmem [shape: f32[128,32], index: 0, kind: input, shape index: {}]   ;;  %s959_s1 = inlined_call_operand.vmem [shape: bf16[32,128], index: 1, kind: input, shape index: {}]   ;;  %s960_s2 = inlined_call_operand.vmem [shape: f32[1,128], index: 2, kind: input, shape index: {}]   ;;  %s961_s3 = inlined_call_operand.vmem [shape: bf16[128,128], index: 3, kind: input, shape index: {}]   ;;  %s962_s4 = inlined_call_operand.vmem [shape: f32[128,1], index: 4, kind: input, shape index: {}]   ;;  %s963_s5 = inlined_call_operand.vmem [shape: f32[128,1], index: 5, kind: input, shape index: {}]   ;;  %s964_s6 = inlined_call_operand.<no memory space> [shape: f32[1], index: 6, kind: input, shape index: {}]   ;;  %s965_s7 = inlined_call_operand.hbm [shape: f32[1,1,128], index: 7, kind: output, shape index: {}]  }
   0x1   :  { %v618_v0 = vld [vmem:[%s959_s1 + $0x8] sm:$0xff]  ;;  %v617_v1 = vld [vmem:[%s959_s1] sm:$0xff] }
   0x2   :  { %104 = vmatpush.bf16.msra.mxu0 %v618_v0  ;;  %v29_v2 = vld [vmem:[%s958_s0] sm:$0xff]  ;;  %v30_v3 = vld [vmem:[%s958_s0 + $0x8] sm:$0xff] }
   0x3   :  { %13 = vsyncpa [#allocation4], 0  ;;  %v45_v4 = vpack.c.bf16 %v30_v3, %v29_v2  ;;  %vm73_vm0 = vcmask 261120   ;;  %v31_v5 = vld [vmem:[%s958_s0 + $0x10] sm:$0xff]  ;;  %v32_v6 = vld [vmem:[%s958_s0 + $0x18] sm:$0xff]  ;;  %v679_v56 = vmov 0  }
   0x4   :  { %v46_v7 = vpack.c.bf16 %v32_v6, %v31_v5  ;;  %v33_v8 = vld [vmem:[%s958_s0 + $0x20] sm:$0xff]  ;;  %v34_v9 = vld [vmem:[%s958_s0 + $0x28] sm:$0xff]  ;;  %v35_v11 = vld [vmem:[%s958_s0 + $0x30] sm:$0xff]  ;;  %645 = vset.pattern.permute.xlu0 %v679_v56  ;;  %646 = vset.pattern.permute.xlu1 %v679_v56 }
   0x5   :  { %v47_v10 = vpack.c.bf16 %v34_v9, %v33_v8  ;;  %v36_v12 = vld [vmem:[%s958_s0 + $0x38] sm:$0xff]  ;;  %v37_v14 = vld [vmem:[%s958_s0 + $0x40] sm:$0xff]  ;;  %v38_v15 = vld [vmem:[%s958_s0 + $0x48] sm:$0xff]  ;;  %647 = vset.pattern.permute.xlu2 %v679_v56 }
   0x6   :  { %105 = vmatpush.bf16.msra.mxu0 %v617_v1  ;;  %v48_v13 = vpack.c.bf16 %v36_v12, %v35_v11  ;;  %v49_v16 = vpack.c.bf16 %v38_v15, %v37_v14  ;;  %v39_v17 = vld [vmem:[%s958_s0 + $0x50] sm:$0xff]  ;;  %v40_v18 = vld [vmem:[%s958_s0 + $0x58] sm:$0xff]  ;;  %v41_v20 = vld [vmem:[%s958_s0 + $0x60] sm:$0xff] }
   0x7   :  { %v50_v19 = vpack.c.bf16 %v40_v18, %v39_v17  ;;  %v42_v21 = vld [vmem:[%s958_s0 + $0x68] sm:$0xff]  ;;  %v43_v23 = vld [vmem:[%s958_s0 + $0x70] sm:$0xff]  ;;  %v44_v24 = vld [vmem:[%s958_s0 + $0x78] sm:$0xff] }
   0x8   :  { %v51_v22 = vpack.c.bf16 %v42_v21, %v41_v20  ;;  %v52_v25 = vpack.c.bf16 %v44_v24, %v43_v23  ;;  %v786_v27 = vld [vmem:[%s960_s2] ss:$0 sm:$0xff]  ;;  %v189_v61 = vld [vmem:[%s962_s4 + $0x10] sm:$0xff]  ;;  %v188_v2 = vld [vmem:[%s962_s4 + $0x8] sm:$0xff]  ;;  %s680_s2 = smov [#allocation3]  }
   0x9   :  { %576 = vmatmul.msk.bf16.vlgmr.msra.gmra.mxu0 %vm73_vm0, %v45_v4  ;;  %v187_v59 = vld [vmem:[%s962_s4] sm:$0xff]  ;;  %215 = vperm.xlu1 %646, %v189_v61   ;;  %v190_v3 = vld [vmem:[%s962_s4 + $0x18] sm:$0xff]  ;;  %v193_v5 = vld [vmem:[%s962_s4 + $0x30] sm:$0xff]  ;;  %s557_s14 = sshll.u32 %s680_s2, 4  ;;  %s558_s14 = int_to_ptr.vmem [resolvable:$true] %s557_s14 }
   0xa   :  { %205 = vperm.xlu0 %645, %v187_v59   ;;  %v194_v6 = vld [vmem:[%s962_s4 + $0x38] sm:$0xff]  ;;  %v196_v8 = vld [vmem:[%s962_s4 + $0x48] sm:$0xff]  ;;  %v197_v9 = vld [vmem:[%s962_s4 + $0x50] sm:$0xff] }
   0xb   :  { %v199_v11 = vld [vmem:[%s962_s4 + $0x60] sm:$0xff]  ;;  %v398_v15 = vld [vmem:[%s963_s5 + $0x10] sm:$0xff]  ;;  %v192_v17 = vld [vmem:[%s962_s4 + $0x28] sm:$0xff] }
   0xc   :  { %v396_v12 = vld [vmem:[%s963_s5] sm:$0xff]  ;;  %v401_v20 = vld [vmem:[%s963_s5 + $0x28] sm:$0xff]  ;;  %v402_v21 = vld [vmem:[%s963_s5 + $0x30] sm:$0xff] }
   0xd   :  { %v624_v56 = vld [vmem:[%s961_s3 + $0x28] sm:$0xff]  ;;  %v626_v59 = vld [vmem:[%s961_s3 + $0x38] sm:$0xff] }
  0x11   :  { %220 = vperm.xlu1 %646, %v190_v3  }
  0x12   :  { %210 = vperm.xlu0 %645, %v188_v2  }
  0x19   :  { %577 = vmatmul.msk.bf16.gmra.mxu0 %vm73_vm0, %v46_v7  ;;  %240 = vperm.xlu1 %646, %v194_v6  }
  0x1a   :  { %235 = vperm.xlu0 %645, %v193_v5  }
  0x21   :  { %255 = vperm.xlu1 %646, %v197_v9  }
  0x22   :  { %250 = vperm.xlu0 %645, %v196_v8  }
  0x29   :  { %578 = vmatmul.msk.bf16.gmra.mxu0 %vm73_vm0, %v47_v10  ;;  %414 = vperm.xlu1 %646, %v396_v12  }
  0x2a   :  { %265 = vperm.xlu0 %645, %v199_v11  }
  0x32   :  { %424 = vperm.xlu0 %645, %v398_v15  }
  0x39   :  { %579 = vmatmul.msk.bf16.gmra.mxu0 %vm73_vm0, %v48_v13  ;;  %v191_v13 = vld [vmem:[%s962_s4 + $0x20] sm:$0xff] }
  0x3a   :  { %225 = vperm.xlu2 %647, %v191_v13   ;;  %439 = vperm.xlu0 %645, %v401_v20  }
  0x42   :  { %230 = vperm.xlu2 %647, %v192_v17  }
  0x49   :  { %580 = vmatmul.msk.bf16.gmra.mxu0 %vm73_vm0, %v49_v16  ;;  %v399_v16 = vld [vmem:[%s963_s5 + $0x18] sm:$0xff] }
  0x4a   :  { %429 = vperm.xlu1 %646, %v399_v16  }
  0x52   :  { %444 = vperm.xlu1 %646, %v402_v21  }
  0x59   :  { %581 = vmatmul.msk.bf16.gmra.mxu0 %vm73_vm0, %v50_v19 }
  0x69   :  { %582 = vmatmul.msk.bf16.gmra.mxu0 %vm73_vm0, %v51_v22  ;;  %v195_v22 = vld [vmem:[%s962_s4 + $0x40] sm:$0xff] }
  0x6a   :  { %245 = vperm.xlu2 %647, %v195_v22  }
  0x79   :  { %583 = vmatmul.msk.bf16.gmra.mxu0 %vm73_vm0, %v52_v25 }
  0x7b   :  { %v216_v61 = vpop.permute.xlu1 %215 }
  0x86   :  { %v107_v26 = vpop.f32.mrf.mxu0 }
  0x87   :  { %v108_v28 = vadd.f32 %v786_v27, %v107_v26 }
  0x89   :  { %v147_v31 = vmax.f32 %v108_v28, 0.0 }
  0x8e   :  { %v109_v29 = vpop.f32.mrf.mxu0 }
  0x8f   :  { %v110_v30 = vadd.f32 %v786_v27, %v109_v29 }
  0x91   :  { %v148_v32 = vmax.f32 %v110_v30, 0.0  ;;  %v404_v30 = vld [vmem:[%s963_s5 + $0x40] sm:$0xff] }
  0x92   :  { %454 = vperm.xlu0 %645, %v404_v30  }
  0x93   :  { %v790_v33 = vpack.c.bf16 %v148_v32, %v147_v31  ;;  %v405_v31 = vld [vmem:[%s963_s5 + $0x48] sm:$0xff]  ;;  %v198_v32 = vld [vmem:[%s962_s4 + $0x58] sm:$0xff] }
  0x94   :  { %260 = vperm.xlu2 %647, %v198_v32   ;;  %459 = vperm.xlu1 %646, %v405_v31  }
  0x96   :  { %v112_v34 = vpop.f32.mrf.mxu0 }
  0x97   :  { %v113_v35 = vadd.f32 %v786_v27, %v112_v34 }
  0x99   :  { %v149_v38 = vmax.f32 %v113_v35, 0.0 }
  0x9e   :  { %v114_v36 = vpop.f32.mrf.mxu0 }
  0x9f   :  { %v115_v37 = vadd.f32 %v786_v27, %v114_v36 }
  0xa1   :  { %v150_v39 = vmax.f32 %v115_v37, 0.0 }
  0xa3   :  { %v794_v40 = vpack.c.bf16 %v150_v39, %v149_v38  ;;  %v200_v39 = vld [vmem:[%s962_s4 + $0x68] sm:$0xff] }
  0xa4   :  { %270 = vperm.xlu0 %645, %v200_v39  }
  0xa6   :  { %v117_v41 = vpop.f32.mrf.mxu0 }
  0xa7   :  { %v118_v42 = vadd.f32 %v786_v27, %v117_v41  ;;  %v407_v41 = vld [vmem:[%s963_s5 + $0x58] sm:$0xff] }
  0xa8   :  { %469 = vperm.xlu1 %646, %v407_v41  }
  0xa9   :  { %v151_v45 = vmax.f32 %v118_v42, 0.0  ;;  %v397_v42 = vld [vmem:[%s963_s5 + $0x8] sm:$0xff] }
  0xaa   :  { %419 = vperm.xlu2 %647, %v397_v42  }
  0xae   :  { %v119_v43 = vpop.f32.mrf.mxu0 }
  0xaf   :  { %v120_v44 = vadd.f32 %v786_v27, %v119_v43 }
  0xb1   :  { %v152_v46 = vmax.f32 %v120_v44, 0.0 }
  0xb3   :  { %v798_v47 = vpack.c.bf16 %v152_v46, %v151_v45  ;;  %v408_v45 = vld [vmem:[%s963_s5 + $0x60] sm:$0xff]  ;;  %v202_v46 = vld [vmem:[%s962_s4 + $0x78] sm:$0xff] }
  0xb4   :  { %474 = vperm.xlu0 %645, %v408_v45   ;;  %280 = vperm.xlu1 %646, %v202_v46  }
  0xb6   :  { %v122_v48 = vpop.f32.mrf.mxu0 }
  0xb7   :  { %v123_v49 = vadd.f32 %v786_v27, %v122_v48  ;;  %v400_v48 = vld [vmem:[%s963_s5 + $0x20] sm:$0xff] }
  0xb8   :  { %434 = vperm.xlu2 %647, %v400_v48  }
  0xb9   :  { %v153_v52 = vmax.f32 %v123_v49, 0.0  ;;  %v410_v49 = vld [vmem:[%s963_s5 + $0x70] sm:$0xff] }
  0xbc   :  { %484 = vperm.xlu0 %645, %v410_v49  }
  0xbe   :  { %v124_v50 = vpop.f32.mrf.mxu0 }
  0xbf   :  { %v125_v51 = vadd.f32 %v786_v27, %v124_v50  ;;  %v411_v50 = vld [vmem:[%s963_s5 + $0x78] sm:$0xff] }
  0xc0   :  { %489 = vperm.xlu1 %646, %v411_v50  }
  0xc1   :  { %v154_v53 = vmax.f32 %v125_v51, 0.0  ;;  %v403_v51 = vld [vmem:[%s963_s5 + $0x38] sm:$0xff] }
  0xc2   :  { %449 = vperm.xlu2 %647, %v403_v51  }
  0xc3   :  { %v802_v54 = vpack.c.bf16 %v154_v53, %v153_v52  ;;  %v406_v52 = vld [vmem:[%s963_s5 + $0x50] sm:$0xff] }
  0xc4   :  { %v201_v53 = vld [vmem:[%s962_s4 + $0x70] sm:$0xff] }
  0xc6   :  { %v127_v55 = vpop.f32.mrf.mxu0 }
  0xc7   :  { %v128_v57 = vadd.f32 %v786_v27, %v127_v55  ;;  %v623_v55 = vld [vmem:[%s961_s3 + $0x20] sm:$0xff] }
  0xc9   :  { %v155_v62 = vmax.f32 %v128_v57, 0.0  ;;  %v621_v57 = vld [vmem:[%s961_s3 + $0x10] sm:$0xff] }
  0xca   :  { %464 = vperm.xlu2 %647, %v406_v52  }
  0xce   :  { %v129_v58 = vpop.f32.mrf.mxu0 }
  0xcf   :  { %v130_v60 = vadd.f32 %v786_v27, %v129_v58  ;;  %v625_v58 = vld [vmem:[%s961_s3 + $0x30] sm:$0xff] }
  0xd1   :  { %v156_v63 = vmax.f32 %v130_v60, 0.0  ;;  %v206_v60 = vpop.permute.xlu0 %205 }
  0xd2   :  { %275 = vperm.xlu2 %647, %v201_v53  }
  0xd3   :  { %v812_v0 = vpack.c.bf16 %v156_v63, %v155_v62  ;;  %v226_v62 = vpop.permute.xlu2 %225 }
  0xd6   :  { %v132_v1 = vpop.f32.mrf.mxu0 }
  0xd7   :  { %v133_v38 = vadd.f32 %v786_v27, %v132_v1 }
  0xd9   :  { %v157_v44 = vmax.f32 %v133_v38, 0.0  ;;  %v211_v63 = vpop.permute.xlu0 %210 }
  0xdb   :  { %v231_v1 = vpop.permute.xlu2 %230 }
  0xde   :  { %v134_v4 = vpop.f32.mrf.mxu0 }
  0xdf   :  { %v135_v36 = vadd.f32 %v786_v27, %v134_v4 }
  0xe1   :  { %v158_v43 = vmax.f32 %v135_v36, 0.0  ;;  %v236_v2 = vpop.permute.xlu0 %235 }
  0xe3   :  { %v246_v4 = vpop.permute.xlu2 %245 }
  0xe6   :  { %v137_v7 = vpop.f32.mrf.mxu0 }
  0xe7   :  { %v138_v29 = vadd.f32 %v786_v27, %v137_v7 }
  0xe9   :  { %v159_v35 = vmax.f32 %v138_v29, 0.0  ;;  %v251_v5 = vpop.permute.xlu0 %250 }
  0xee   :  { %v139_v10 = vpop.f32.mrf.mxu0  ;;  %v261_v8 = vpop.permute.xlu2 %260 }
  0xef   :  { %v140_v26 = vadd.f32 %v786_v27, %v139_v10 }
  0xf1   :  { %v160_v34 = vmax.f32 %v140_v26, 0.0  ;;  %v949_v9 = vpop.permute.xlu0 %265 }
  0xf3   :  { %v185_v37 = vpack.c.bf16 %v160_v34, %v159_v35 }
  0xf6   :  { %v142_v14 = vpop.f32.mrf.mxu0 }
  0xf7   :  { %v143_v18 = vadd.f32 %v786_v27, %v142_v14 }
  0xf9   :  { %v161_v24 = vmax.f32 %v143_v18, 0.0  ;;  %v425_v14 = vpop.permute.xlu0 %424 }
  0xfe   :  { %v144_v19 = vpop.f32.mrf.mxu0 }
  0xff   :  { %v145_v23 = vadd.f32 %v786_v27, %v144_v19  ;;  %v184_v27 = vpack.c.bf16 %v158_v43, %v157_v44 }
 0x101   :  { %v162_v25 = vmax.f32 %v145_v23, 0.0  ;;  %v440_v21 = vpop.permute.xlu0 %439 }
 0x103   :  { %v186_v28 = vpack.c.bf16 %v162_v25, %v161_v24 }
 0x104   :  { %v420_v13 = vpop.permute.xlu2 %419 }
 0x105   :  { %331 = vmatpush.bf16.xpose.msra.mxu1 %v186_v28  ;;  %627 = vmatpush.bf16.xpose.msra.mxu2 %v186_v28 }
 0x106   :  { %628 = vmatpush.bf16.xpose.msra.mxu3 %v186_v28 }
 0x10d   :  { %332 = vmatpush.bf16.xpose.msra.mxu1 %v185_v37  ;;  %629 = vmatpush.bf16.xpose.msra.mxu2 %v185_v37 }
 0x10e   :  { %630 = vmatpush.bf16.xpose.msra.mxu3 %v185_v37  ;;  %v455_v37 = vpop.permute.xlu0 %454 }
 0x112   :  { %v435_v18 = vpop.permute.xlu2 %434 }
 0x115   :  { %333 = vmatpush.bf16.xpose.msra.mxu1 %v184_v27  ;;  %631 = vmatpush.bf16.xpose.msra.mxu2 %v184_v27 }
 0x116   :  { %632 = vmatpush.bf16.xpose.msra.mxu3 %v184_v27 }
 0x11c   :  { %v450_v28 = vpop.permute.xlu2 %449 }
 0x11d   :  { %334 = vmatpush.bf16.xpose.msra.mxu1 %v812_v0  ;;  %633 = vmatpush.bf16.xpose.msra.mxu2 %v812_v0 }
 0x11e   :  { %634 = vmatpush.bf16.xpose.msra.mxu3 %v812_v0  ;;  %v221_v0 = vpop.permute.xlu1 %220 }
 0x124   :  { %v465_v51 = vpop.permute.xlu2 %464 }
 0x125   :  { %335 = vmatpush.bf16.xpose.msra.mxu1 %v802_v54  ;;  %635 = vmatpush.bf16.xpose.msra.mxu2 %v802_v54 }
 0x126   :  { %636 = vmatpush.bf16.xpose.msra.mxu3 %v802_v54  ;;  %v409_v54 = vld [vmem:[%s963_s5 + $0x68] sm:$0xff]  ;;  %v241_v3 = vpop.permute.xlu1 %240 }
 0x127   :  { %479 = vperm.xlu2 %647, %v409_v54  }
 0x12d   :  { %336 = vmatpush.bf16.xpose.msra.mxu1 %v798_v47  ;;  %637 = vmatpush.bf16.xpose.msra.mxu2 %v798_v47 }
 0x12e   :  { %638 = vmatpush.bf16.xpose.msra.mxu3 %v798_v47  ;;  %v619_v47 = vld [vmem:[%s961_s3] sm:$0xff]  ;;  %v256_v6 = vpop.permute.xlu1 %255 }
 0x135   :  { %337 = vmatpush.bf16.xpose.msra.mxu1 %v794_v40  ;;  %639 = vmatpush.bf16.xpose.msra.mxu2 %v794_v40 }
 0x136   :  { %640 = vmatpush.bf16.xpose.msra.mxu3 %v794_v40  ;;  %v622_v40 = vld [vmem:[%s961_s3 + $0x18] sm:$0xff]  ;;  %v415_v10 = vpop.permute.xlu1 %414 }
 0x13d   :  { %338 = vmatpush.bf16.xpose.msra.mxu1 %v790_v33  ;;  %641 = vmatpush.bf16.xpose.msra.mxu2 %v790_v33 }
 0x13e   :  { %642 = vmatpush.bf16.xpose.msra.mxu3 %v790_v33  ;;  %v620_v33 = vld [vmem:[%s961_s3 + $0x8] sm:$0xff]  ;;  %v430_v17 = vpop.permute.xlu1 %429 }
 0x144   :  { %339 = vmatmul.bf16.vlgmr.msra.gmra.mxu1 %v619_v47  ;;  %354 = vmatmul.bf16.vlgmr.msra.gmra.mxu2 %v622_v40 }
 0x145   :  { %359 = vmatmul.bf16.vlgmr.msra.gmra.mxu3 %v623_v55 }
 0x146   :  { %v445_v22 = vpop.permute.xlu1 %444 }
 0x14e   :  { %v460_v41 = vpop.permute.xlu1 %459 }
 0x154   :  { %344 = vmatmul.bf16.gmra.mxu1 %v620_v33 }
 0x155   :  { %364 = vmatmul.bf16.gmra.mxu3 %v624_v56 }
 0x164   :  { %349 = vmatmul.bf16.gmra.mxu1 %v621_v57  ;;  %v271_v57 = vpop.permute.xlu0 %270 }
 0x165   :  { %369 = vmatmul.bf16.gmra.mxu3 %v625_v58 }
 0x175   :  { %374 = vmatmul.bf16.gmra.mxu3 %v626_v59 }
 0x1c1   :  { %v340_v7 = vpop.f32.mrf.mxu1 }
 0x1c2   :  { %v341_v25 = vadd.f32 %v340_v7, %v206_v60 }
 0x1c4   :  { %v380_v34 = vmax.f32 %v341_v25, 0.0 }
 0x1c6   :  { %v492_v42 = vmul.f32 %v415_v10, %v380_v34 }
 0x1c7   :  { %v355_v24 = vpop.f32.mrf.mxu2 }
 0x1c8   :  { %v360_v11 = vpop.f32.mrf.mxu3  ;;  %v356_v45 = vadd.f32 %v355_v24, %v236_v2 }
 0x1c9   :  { %v342_v12 = vpop.f32.mrf.mxu1  ;;  %v361_v55 = vadd.f32 %v360_v11, %v246_v4 }
 0x1ca   :  { %v343_v23 = vadd.f32 %v342_v12, %v211_v63  ;;  %v386_v40 = vmax.f32 %v356_v45, 0.0 }
 0x1cc   :  { %v381_v29 = vmax.f32 %v343_v23, 0.0  ;;  %v498_v63 = vmul.f32 %v445_v22, %v386_v40 }
 0x1ce   :  { %v493_v38 = vmul.f32 %v420_v13, %v381_v29 }
 0x1cf   :  { %v357_v27 = vpop.f32.mrf.mxu2 }
 0x1d0   :  { %v362_v15 = vpop.f32.mrf.mxu3  ;;  %v508_v46 = vadd.f32 %v493_v38, %v492_v42  ;;  %v358_v52 = vadd.f32 %v357_v27, %v241_v3 }
 0x1d1   :  { %v345_v16 = vpop.f32.mrf.mxu1  ;;  %v363_v59 = vadd.f32 %v362_v15, %v251_v5 }
 0x1d2   :  { %v346_v26 = vadd.f32 %v345_v16, %v216_v61  ;;  %v387_v58 = vmax.f32 %v358_v52, 0.0 }
 0x1d3   :  { %v389_v3 = vmax.f32 %v363_v59, 0.0 }
 0x1d4   :  { %v382_v35 = vmax.f32 %v346_v26, 0.0  ;;  %v499_v12 = vmul.f32 %v450_v28, %v387_v58 }
 0x1d6   :  { %v494_v43 = vmul.f32 %v425_v14, %v382_v35 }
 0x1d8   :  { %v365_v19 = vpop.f32.mrf.mxu3  ;;  %v509_v53 = vadd.f32 %v508_v46, %v494_v43 }
 0x1d9   :  { %v347_v20 = vpop.f32.mrf.mxu1  ;;  %v366_v2 = vadd.f32 %v365_v19, %v256_v6 }
 0x1da   :  { %v348_v30 = vadd.f32 %v347_v20, %v221_v0  ;;  %v388_v0 = vmax.f32 %v361_v55, 0.0 }
 0x1db   :  { %v390_v4 = vmax.f32 %v366_v2, 0.0 }
 0x1dc   :  { %v383_v39 = vmax.f32 %v348_v30, 0.0  ;;  %v500_v16 = vmul.f32 %v455_v37, %v388_v0 }
 0x1dd   :  { %v502_v22 = vmul.f32 %v465_v51, %v390_v4  ;;  %v530_v51 = vstv %s964_s6  ;;  %s559_s6 = sshll.u32 %s965_s7, 4  ;;  %s560_s6 = int_to_ptr.hbm [resolvable:$true] %s559_s6 }
 0x1de   :  { %v495_v48 = vmul.f32 %v430_v17, %v383_v39 }
 0x1e0   :  { %v367_v31 = vpop.f32.mrf.mxu3  ;;  %v510_v33 = vadd.f32 %v509_v53, %v495_v48 }
 0x1e1   :  { %v350_v32 = vpop.f32.mrf.mxu1  ;;  %v368_v13 = vadd.f32 %v367_v31, %v261_v8 }
 0x1e2   :  { %v351_v36 = vadd.f32 %v350_v32, %v226_v62  ;;  %v470_v62 = vpop.permute.xlu1 %469 }
 0x1e3   :  { %v391_v5 = vmax.f32 %v368_v13, 0.0 }
 0x1e4   :  { %v384_v44 = vmax.f32 %v351_v36, 0.0 }
 0x1e5   :  { %v503_v25 = vmul.f32 %v470_v62, %v391_v5 }
 0x1e6   :  { %v496_v54 = vmul.f32 %v435_v18, %v384_v44  ;;  %v501_v18 = vmul.f32 %v460_v41, %v389_v3 }
 0x1e8   :  { %v370_v49 = vpop.f32.mrf.mxu3  ;;  %v511_v60 = vadd.f32 %v510_v33, %v496_v54 }
 0x1e9   :  { %v352_v50 = vpop.f32.mrf.mxu1  ;;  %v371_v11 = vadd.f32 %v370_v49, %v949_v9 }
 0x1ea   :  { %v353_v47 = vadd.f32 %v352_v50, %v231_v1  ;;  %v276_v1 = vpop.permute.xlu2 %275  ;;  %v281_v24 = vpop.permute.xlu1 %280 }
 0x1eb   :  { %v392_v23 = vmax.f32 %v371_v11, 0.0 }
 0x1ec   :  { %v385_v56 = vmax.f32 %v353_v47, 0.0 }
 0x1ee   :  { %v497_v61 = vmul.f32 %v440_v21, %v385_v56  ;;  %v475_v21 = vpop.permute.xlu0 %474 }
 0x1ef   :  { %v504_v29 = vmul.f32 %v475_v21, %v392_v23 }
 0x1f0   :  { %v512_v7 = vadd.f32 %v511_v60, %v497_v61  ;;  %v372_v10 = vpop.f32.mrf.mxu3 }
 0x1f1   :  { %v373_v20 = vadd.f32 %v372_v10, %v271_v57 }
 0x1f2   :  { %v513_v14 = vadd.f32 %v512_v7, %v498_v63  ;;  %v480_v31 = vpop.permute.xlu2 %479  ;;  %v490_v42 = vpop.permute.xlu1 %489 }
 0x1f3   :  { %v393_v8 = vmax.f32 %v373_v20, 0.0 }
 0x1f4   :  { %v514_v17 = vadd.f32 %v513_v14, %v499_v12 }
 0x1f5   :  { %v505_v9 = vmul.f32 %v480_v31, %v393_v8 }
 0x1f6   :  { %v515_v15 = vadd.f32 %v514_v17, %v500_v16  ;;  %v485_v38 = vpop.permute.xlu0 %484 }
 0x1f8   :  { %v516_v6 = vadd.f32 %v515_v15, %v501_v18  ;;  %v375_v19 = vpop.f32.mrf.mxu3 }
 0x1f9   :  { %v376_v28 = vadd.f32 %v375_v19, %v276_v1 }
 0x1fa   :  { %v517_v26 = vadd.f32 %v516_v6, %v502_v22 }
 0x1fb   :  { %v394_v34 = vmax.f32 %v376_v28, 0.0 }
 0x1fc   :  { %v518_v30 = vadd.f32 %v517_v26, %v503_v25 }
 0x1fd   :  { %v506_v39 = vmul.f32 %v485_v38, %v394_v34 }
 0x1fe   :  { %v519_v32 = vadd.f32 %v518_v30, %v504_v29 }
 0x200   :  { %v377_v35 = vpop.f32.mrf.mxu3  ;;  %v520_v36 = vadd.f32 %v519_v32, %v505_v9 }
 0x201   :  { %v378_v37 = vadd.f32 %v377_v35, %v281_v24 }
 0x202   :  { %v521_v43 = vadd.f32 %v520_v36, %v506_v39 }
 0x203   :  { %v395_v41 = vmax.f32 %v378_v37, 0.0 }
 0x205   :  { %v507_v44 = vmul.f32 %v490_v42, %v395_v41 }
 0x207   :  { %v522_v27 = vadd.f32 %v521_v43, %v507_v44 }
 0x209   :  { %v523_v45 = vrot.slane %v522_v27, 4 }
 0x20b   :  { %v524_v46 = vadd.f32 %v523_v45, %v522_v27 }
 0x20d   :  { %v525_v48 = vrot.slane %v524_v46, 2 }
 0x20f   :  { %v526_v49 = vadd.f32 %v525_v48, %v524_v46 }
 0x211   :  { %v527_v50 = vrot.slane %v526_v49, 1 }
 0x213   :  { %v528_v52 = vadd.f32 %v527_v50, %v526_v49 }
 0x215   :  { %v531_v53 = vadd.f32 %v530_v51, %v528_v52 }
 0x217   :  { %v616_v54 = vmul.f32 -1.442695, %v531_v53 }
 0x219   :  { %649 = vpow2.f32 %v616_v54 }
 0x21f   :  { %v650_v47 = vpop.eup %649 }
 0x220   :  { %v535_v40 = vadd.f32 1.0, %v650_v47 }
 0x222   :  { %651 = vrcp.f32 %v535_v40  ;;  %v547_v57 = vand.u32 2147483648, %v535_v40  ;;  %v545_v59 = vand.u32 2147483647, %v535_v40  ;;  %vm541_vm2 = vweird.f32 %v535_v40 }
 0x224   :  { %v548_v61 = vor.u32 1.1754944e-38, %v547_v57  ;;  %vm546_vm4 = vcmp.eq.f32.partialorder %v545_v59, 8.507059e+37 }
 0x228   :  { %v652_v55 = vpop.eup %651 }
 0x229   :  { %v537_v33 = vmul.f32 %v652_v55, %v535_v40  ;;  %vm542_vm1 = vweird.f32 %v652_v55 }
 0x22a   :  { %vm543_vm3 = vmor %vm541_vm2, %vm542_vm1 }
 0x22b   :  { %v538_v56 = vsub.f32 1.0, %v537_v33 }
 0x22d   :  { %v539_v58 = vmul.f32 %v652_v55, %v538_v56 }
 0x22f   :  { %v540_v60 = vadd.f32 %v652_v55, %v539_v58 }
 0x231   :  { %v544_v62 = vsel %vm543_vm3, %v652_v55, %v540_v60 }
 0x232   :  { %v549_v63 = vsel %vm546_vm4, %v548_v61, %v544_v62 }
 0x233   :  { %551 = vst [vmem:[#allocation3] sm:$0x1] %v549_v63 }
 0x234   :  { %562 = dma.vmem_to_hbm [thread:$0]  %s558_s14, 16, %s560_s6, [#allocation4]  }
 0x235   :  { %677 = dma.done.wait [#allocation4], 16  }
 0x236   :  { %678 = vsyncadd [#allocation4], 4294967280 }
 0x237   :  { %567 = vsyncpa [#allocation4], 1 }

</bundles_post_ra>
